<compile_context>
chip_gen: v5e
topology: v5e:2x2
jax: 0.10.0
libtpu: 0.0.40
codegen_flags: <defaults>
</compile_context>

<pallas_src>
import functools
import math

import jax
import jax.numpy as jnp
from jax.experimental import pallas as pl
from jax.experimental.pallas import tpu as pltpu


_GELU_C = math.sqrt(2.0 / math.pi)
_BUF_BUDGET = 2 << 20  # ~2 MiB per pipelined buffer keeps the total working
                       # set well under every generation's scoped-VMEM budget.


def _gelu_tanh(x):
    return 0.5 * x * (1.0 + jnp.tanh(_GELU_C * (x + 0.044715 * x * x * x)))


def _round_up(x, m):
    return (x + m - 1) // m * m


def _fused_tiles(M, K, H, N):
    """Pick (tm, M_pad, th, H_pad) for the fused kernel."""
    # tm: output-tile rows.  Sublane aligned; capped so the f32 accumulator
    # (tm, N) and the x tile (tm, K) stay under the per-buffer budget.
    row_cap = max(8, (_BUF_BUDGET // (4 * max(N, K))) // 8 * 8)
    tm = min(512, _round_up(M, 8), row_cap)
    M_pad = _round_up(M, tm)

    # th: hidden block.  Lane aligned (or full extent); capped so the w1
    # (K, th) and w2 (th, N) blocks stay under the per-buffer budget.
    col_cap = max(128, (_BUF_BUDGET // (2 * max(N, K))) // 128 * 128)
    if H <= min(512, col_cap):
        th, H_pad = H, H
    else:
        th = min(512, col_cap)
        H_pad = _round_up(H, th)
    return tm, M_pad, th, H_pad


def _fused_mlp_kernel(seed_ref, x_ref, w1_ref, b1_ref, w2_ref, b2_ref,
                      o_ref, acc_ref, *, apply_dropout, keep_threshold,
                      inv_keep, mxu_dtype):
    """One (tm, N) output tile; hidden dim is the inner reduction grid axis."""
    hb = pl.program_id(1)

    @pl.when(hb == 0)
    def _init():
        acc_ref[...] = jnp.zeros_like(acc_ref)

    # fc1 block: (tm, K) @ (K, th) on the MXU, f32 result; bias + GELU in f32.
    h = jnp.dot(x_ref[...], w1_ref[...], preferred_element_type=jnp.float32)
    h = _gelu_tanh(h + b1_ref[...])

    if apply_dropout:
        # Independent stream per (row tile, hidden block); VPU-side, no HBM.
        pltpu.prng_seed(seed_ref[0]
                        + pl.program_id(0) * 1000003
                        + hb * 7919)
        bits = pltpu.bitcast(pltpu.prng_random_bits(h.shape), jnp.uint32)
        h = jnp.where(bits < jnp.uint32(keep_threshold), h * inv_keep, 0.0)

    # fc2 partial product, accumulated over hidden blocks in f32.
    acc_ref[...] += jnp.dot(h.astype(mxu_dtype), w2_ref[...],
                            preferred_element_type=jnp.float32)

    @pl.when(hb == pl.num_programs(1) - 1)
    def _finalize():
        y = acc_ref[...] + b2_ref[...]
        if apply_dropout:
            bits = pltpu.bitcast(pltpu.prng_random_bits(y.shape), jnp.uint32)
            y = jnp.where(bits < jnp.uint32(keep_threshold), y * inv_keep, 0.0)
        o_ref[...] = y.astype(o_ref.dtype)


def fused_mlp(x2, w1, b1, w2, b2, *, drop=0.0, apply_dropout=False, seed=0,
              mxu_dtype=jnp.bfloat16):
    """y = drop(gelu(x2 @ w1 + b1) -> drop -> @ w2 + b2), hidden never in HBM."""
    M, K = x2.shape
    H = w1.shape[1]
    N = w2.shape[1]
    out_dtype = x2.dtype

    tm, M_pad, th, H_pad = _fused_tiles(M, K, H, N)

    # Zero padding is exact: padded rows are sliced off, padded hidden columns
    # contribute gelu(0) @ 0 == 0.
    if M_pad != M:
        x2 = jnp.pad(x2, ((0, M_pad - M), (0, 0)))
    if H_pad != H:
        w1 = jnp.pad(w1, ((0, 0), (0, H_pad - H)))
        b1 = jnp.pad(b1, (0, H_pad - H))
        w2 = jnp.pad(w2, ((0, H_pad - H), (0, 0)))

    # bf16 MXU operands (halves weight HBM traffic too); biases stay f32.
    x2 = x2.astype(mxu_dtype)
    w1 = w1.astype(mxu_dtype)
    w2 = w2.astype(mxu_dtype)
    b1 = b1.astype(jnp.float32).reshape(1, H_pad)
    b2 = b2.astype(jnp.float32).reshape(1, N)
    seed_arr = jnp.asarray(seed, dtype=jnp.int32).reshape((1,))

    grid = (M_pad // tm, H_pad // th)
    keep = 1.0 - float(drop)
    keep_threshold = min(int(round(keep * (2 ** 32))), 2 ** 32 - 1)

    kernel = functools.partial(
        _fused_mlp_kernel,
        apply_dropout=bool(apply_dropout and drop > 0.0),
        keep_threshold=keep_threshold,
        inv_keep=(1.0 / keep) if keep > 0.0 else 0.0,
        mxu_dtype=mxu_dtype,
    )

    w_bytes = (w1.size * w1.dtype.itemsize + w2.size * w2.dtype.itemsize)
    cost = pl.CostEstimate(
        flops=2 * M_pad * H_pad * (K + N),
        transcendentals=M_pad * H_pad,
        bytes_accessed=int(x2.size * x2.dtype.itemsize
                           + grid[0] * w_bytes
                           + M_pad * N * jnp.dtype(out_dtype).itemsize),
    )

    out = pl.pallas_call(
        kernel,
        out_shape=jax.ShapeDtypeStruct((M_pad, N), out_dtype),
        grid_spec=pltpu.PrefetchScalarGridSpec(
            num_scalar_prefetch=1,           # dropout seed (SMEM)
            grid=grid,
            in_specs=[
                pl.BlockSpec((tm, K), lambda i, h, s: (i, 0)),   # x tile
                pl.BlockSpec((K, th), lambda i, h, s: (0, h)),   # w1 block
                pl.BlockSpec((1, th), lambda i, h, s: (0, h)),   # b1 block
                pl.BlockSpec((th, N), lambda i, h, s: (h, 0)),   # w2 block
                pl.BlockSpec((1, N), lambda i, h, s: (0, 0)),    # b2
            ],
            out_specs=pl.BlockSpec((tm, N), lambda i, h, s: (i, 0)),
            scratch_shapes=[pltpu.VMEM((tm, N), jnp.float32)],
        ),
        compiler_params=pltpu.CompilerParams(
            dimension_semantics=("parallel", "arbitrary"),
            vmem_limit_bytes=48 * 1024 * 1024,
        ),
        cost_estimate=cost,
    )(seed_arr, x2, w1, b1, w2, b2)

    return out[:M] if M_pad != M else out


class Mlp:
    """JAX/Pallas mirror of the PyTorch Mlp module."""

    def __init__(self, in_features, hidden_features=None, out_features=None,
                 drop=0.0, *, key, dtype=jnp.float32):
        out_features = out_features or in_features
        hidden_features = hidden_features or in_features
        k1, k2, k3, k4 = jax.random.split(key, 4)

        def _linear_init(kw, kb, fan_in, fan_out):
            # PyTorch nn.Linear default init: U(-1/sqrt(fan_in), 1/sqrt(fan_in)).
            bound = 1.0 / math.sqrt(fan_in)
            w_ = jax.random.uniform(kw, (fan_in, fan_out), dtype, -bound, bound)
            b_ = jax.random.uniform(kb, (fan_out,), dtype, -bound, bound)
            return w_, b_

        self.w1, self.b1 = _linear_init(k1, k2, in_features, hidden_features)
        self.w2, self.b2 = _linear_init(k3, k4, hidden_features, out_features)
        self.drop = float(drop)
        self.training = True

    def __call__(self, x, *, key=None):
        training_dropout = self.training and self.drop > 0.0
        if training_dropout and key is None:
            raise ValueError("key required when training with drop > 0")
        seed = 0
        if training_dropout:
            seed = jax.random.randint(key, (), 0, jnp.iinfo(jnp.int32).max,
                                      dtype=jnp.int32)
        lead = x.shape[:-1]
        x2 = x.reshape(-1, self.w1.shape[0])
        y = fused_mlp(x2, self.w1, self.b1, self.w2, self.b2,
                      drop=self.drop, apply_dropout=training_dropout,
                      seed=seed)
        return y.reshape(*lead, self.w2.shape[1])


if __name__ == "__main__":
    root = jax.random.PRNGKey(0)
    k_x, k_p, k_x2, k_p2 = jax.random.split(root, 4)

    # Primary check: small transformer-Mlp shapes (batch=2, seq=8, in=32, hidden=64).
    B, S, C_IN, C_HID = 2, 8, 32, 64
    x = jax.random.normal(k_x, (B, S, C_IN), dtype=jnp.float32)
    mlp = Mlp(C_IN, hidden_features=C_HID, drop=0.0, key=k_p)
    mlp.training = False
    y = jax.block_until_ready(mlp(x))
    assert y.shape == (B, S, C_IN)

    ref = (jax.nn.gelu(x.reshape(-1, C_IN) @ mlp.w1 + mlp.b1, approximate=False)
           @ mlp.w2 + mlp.b2).reshape(B, S, C_IN)
    err = float(jnp.max(jnp.abs(y - ref)))
    assert jnp.allclose(y, ref, atol=2e-2, rtol=2e-2), f"mismatch: {err}"

    # Secondary check: exercises M padding (520 -> 1024), the parallel M grid
    # axis and the hidden-block reduction axis (grid = (2, 2)).
    M2, C2, H2 = 520, 128, 1024
    x_b = jax.random.normal(k_x2, (M2, C2), dtype=jnp.float32)
    mlp_b = Mlp(C2, hidden_features=H2, drop=0.0, key=k_p2)
    mlp_b.training = False
    y_b = jax.block_until_ready(mlp_b(x_b))
    assert y_b.shape == (M2, C2)
    ref_b = (jax.nn.gelu(x_b @ mlp_b.w1 + mlp_b.b1, approximate=False)
             @ mlp_b.w2 + mlp_b.b2)
    err_b = float(jnp.max(jnp.abs(y_b - ref_b)))
    assert jnp.allclose(y_b, ref_b, atol=2e-2, rtol=2e-2), f"mismatch: {err_b}"

    print("KERNEL_OK")
</pallas_src>

<mosaic_0001>
module attributes {stable_mosaic.version = 11 : i64} {
  func.func @_fused_mlp_kernel(%arg0: i32, %arg1: i32, %arg2: memref<1xi32, #tpu.memory_space<smem>>, %arg3: memref<16x32xbf16, #tpu.memory_space<vmem>>, %arg4: memref<32x64xbf16, #tpu.memory_space<vmem>>, %arg5: memref<1x64xf32, #tpu.memory_space<vmem>>, %arg6: memref<64x32xbf16, #tpu.memory_space<vmem>>, %arg7: memref<1x32xf32, #tpu.memory_space<vmem>>, %arg8: memref<16x32xf32, #tpu.memory_space<vmem>>, %arg9: memref<16x32xf32, #tpu.memory_space<vmem>>) attributes {dimension_semantics = [#tpu.dimension_semantics<parallel>, #tpu.dimension_semantics<arbitrary>], iteration_bounds = array<i64: 1, 1>, scalar_prefetch = 1 : i64, scratch_operands = 1 : i64, tpu.core_type = #tpu.core_type<tc>, window_params = [{transform_indices = @transform_0, window_bounds = array<i64: 16, 32>}, {transform_indices = @transform_1, window_bounds = array<i64: 32, 64>}, {transform_indices = @transform_2, window_bounds = array<i64: 1, 64>}, {transform_indices = @transform_3, window_bounds = array<i64: 64, 32>}, {pipeline_mode = #tpu.pipeline_mode<synchronous>, transform_indices = @transform_4, window_bounds = array<i64: 1, 32>}, {transform_indices = @transform_5, window_bounds = array<i64: 16, 32>}]} {
    %c0_i32 = arith.constant 0 : i32
    %0 = arith.cmpi eq, %arg1, %c0_i32 : i32
    %1 = arith.extui %0 : i1 to i32
    %c0_i32_0 = arith.constant 0 : i32
    %2 = arith.cmpi ne, %1, %c0_i32_0 : i32
    scf.if %2 {
      %cst_19 = arith.constant 0.000000e+00 : f32
      %31 = vector.broadcast %cst_19 : f32 to vector<16x32xf32>
      %c0_20 = arith.constant 0 : index
      %c0_21 = arith.constant 0 : index
      %32 = vector.load %arg9[%c0_20, %c0_21] : memref<16x32xf32, #tpu.memory_space<vmem>>, vector<16x32xf32>
      tpu.vector_store %arg9[%c0_20, %c0_21], %31 {strides = array<i32>} : memref<16x32xf32, #tpu.memory_space<vmem>>, vector<16x32xf32>,
    } else {
    }
    %c0 = arith.constant 0 : index
    %c0_1 = arith.constant 0 : index
    %3 = vector.load %arg3[%c0, %c0_1] : memref<16x32xbf16, #tpu.memory_space<vmem>>, vector<16x32xbf16>
    %c0_2 = arith.constant 0 : index
    %c0_3 = arith.constant 0 : index
    %4 = vector.load %arg4[%c0_2, %c0_3] : memref<32x64xbf16, #tpu.memory_space<vmem>>, vector<32x64xbf16>
    %cst = arith.constant dense<0.000000e+00> : vector<16x64xf32>
    %5 = tpu.matmul %3, %4, %cst {dimension_numbers = #tpu.dot_dimension_numbers<[1], [0], [0], [1], [0, 0, 1, 1], [], []>} : vector<16x32xbf16>, vector<32x64xbf16>, vector<16x64xf32> -> vector<16x64xf32>
    %c0_4 = arith.constant 0 : index
    %c0_5 = arith.constant 0 : index
    %6 = vector.load %arg5[%c0_4, %c0_5] : memref<1x64xf32, #tpu.memory_space<vmem>>, vector<1x64xf32>
    %7 = vector.broadcast %6 : vector<1x64xf32> to vector<16x64xf32>
    %8 = arith.addf %5, %7 : vector<16x64xf32>
    %cst_6 = arith.constant 5.000000e-01 : f32
    %9 = vector.broadcast %cst_6 : f32 to vector<16x64xf32>
    %10 = arith.mulf %9, %8 : vector<16x64xf32>
    %cst_7 = arith.constant 4.471500e-02 : f32
    %11 = vector.broadcast %cst_7 : f32 to vector<16x64xf32>
    %12 = arith.mulf %11, %8 : vector<16x64xf32>
    %13 = arith.mulf %12, %8 : vector<16x64xf32>
    %14 = arith.mulf %13, %8 : vector<16x64xf32>
    %15 = arith.addf %8, %14 : vector<16x64xf32>
    %cst_8 = arith.constant 0.797884583 : f32
    %16 = vector.broadcast %cst_8 : f32 to vector<16x64xf32>
    %17 = arith.mulf %16, %15 : vector<16x64xf32>
    %18 = math.tanh %17 : vector<16x64xf32>
    %cst_9 = arith.constant 1.000000e+00 : f32
    %19 = vector.broadcast %cst_9 : f32 to vector<16x64xf32>
    %20 = arith.addf %19, %18 : vector<16x64xf32>
    %21 = arith.mulf %10, %20 : vector<16x64xf32>
    %c0_10 = arith.constant 0 : index
    %c0_11 = arith.constant 0 : index
    %22 = vector.load %arg9[%c0_10, %c0_11] : memref<16x32xf32, #tpu.memory_space<vmem>>, vector<16x32xf32>
    %23 = arith.truncf %21 : vector<16x64xf32> to vector<16x64xbf16>
    %c0_12 = arith.constant 0 : index
    %c0_13 = arith.constant 0 : index
    %24 = vector.load %arg6[%c0_12, %c0_13] : memref<64x32xbf16, #tpu.memory_space<vmem>>, vector<64x32xbf16>
    %cst_14 = arith.constant dense<0.000000e+00> : vector<16x32xf32>
    %25 = tpu.matmul %23, %24, %cst_14 {dimension_numbers = #tpu.dot_dimension_numbers<[1], [0], [0], [1], [0, 0, 1, 1], [], []>} : vector<16x64xbf16>, vector<64x32xbf16>, vector<16x32xf32> -> vector<16x32xf32>
    %26 = arith.addf %22, %25 : vector<16x32xf32>
    %c0_15 = arith.constant 0 : index
    %c0_16 = arith.constant 0 : index
    %27 = vector.load %arg9[%c0_15, %c0_16] : memref<16x32xf32, #tpu.memory_space<vmem>>, vector<16x32xf32>
    tpu.vector_store %arg9[%c0_15, %c0_16], %26 {strides = array<i32>} : memref<16x32xf32, #tpu.memory_space<vmem>>, vector<16x32xf32>,
    %c0_i32_17 = arith.constant 0 : i32
    %28 = arith.cmpi eq, %arg1, %c0_i32_17 : i32
    %29 = arith.extui %28 : i1 to i32
    %c0_i32_18 = arith.constant 0 : i32
    %30 = arith.cmpi ne, %29, %c0_i32_18 : i32
    scf.if %30 {
      %c0_19 = arith.constant 0 : index
      %c0_20 = arith.constant 0 : index
      %31 = vector.load %arg9[%c0_19, %c0_20] : memref<16x32xf32, #tpu.memory_space<vmem>>, vector<16x32xf32>
      %c0_21 = arith.constant 0 : index
      %c0_22 = arith.constant 0 : index
      %32 = vector.load %arg7[%c0_21, %c0_22] : memref<1x32xf32, #tpu.memory_space<vmem>>, vector<1x32xf32>
      %33 = vector.broadcast %32 : vector<1x32xf32> to vector<16x32xf32>
      %34 = arith.addf %31, %33 : vector<16x32xf32>
      %c0_23 = arith.constant 0 : index
      %c0_24 = arith.constant 0 : index
      %35 = vector.load %arg8[%c0_23, %c0_24] : memref<16x32xf32, #tpu.memory_space<vmem>>, vector<16x32xf32>
      tpu.vector_store %arg8[%c0_23, %c0_24], %34 {strides = array<i32>} : memref<16x32xf32, #tpu.memory_space<vmem>>, vector<16x32xf32>,
    } else {
    }
    return
  }
  func.func @transform_0(%arg0: i32, %arg1: i32, %arg2: memref<1xi32, #tpu.memory_space<smem>>) -> (i32, i32) {
    %c0_i32 = arith.constant 0 : i32
    %c0_i32_0 = arith.constant 0 : i32
    return %arg0, %c0_i32 : i32, i32
  }
  func.func @transform_1(%arg0: i32, %arg1: i32, %arg2: memref<1xi32, #tpu.memory_space<smem>>) -> (i32, i32) {
    %c0_i32 = arith.constant 0 : i32
    %c0_i32_0 = arith.constant 0 : i32
    return %c0_i32, %arg1 : i32, i32
  }
  func.func @transform_2(%arg0: i32, %arg1: i32, %arg2: memref<1xi32, #tpu.memory_space<smem>>) -> (i32, i32) {
    %c0_i32 = arith.constant 0 : i32
    %c0_i32_0 = arith.constant 0 : i32
    return %c0_i32, %arg1 : i32, i32
  }
  func.func @transform_3(%arg0: i32, %arg1: i32, %arg2: memref<1xi32, #tpu.memory_space<smem>>) -> (i32, i32) {
    %c0_i32 = arith.constant 0 : i32
    %c0_i32_0 = arith.constant 0 : i32
    return %arg1, %c0_i32 : i32, i32
  }
  func.func @transform_4(%arg0: i32, %arg1: i32, %arg2: memref<1xi32, #tpu.memory_space<smem>>) -> (i32, i32) {
    %c0_i32 = arith.constant 0 : i32
    %c0_i32_0 = arith.constant 0 : i32
    %c0_i32_1 = arith.constant 0 : i32
    return %c0_i32, %c0_i32_0 : i32, i32
  }
  func.func @transform_5(%arg0: i32, %arg1: i32, %arg2: memref<1xi32, #tpu.memory_space<smem>>) -> (i32, i32) {
    %c0_i32 = arith.constant 0 : i32
    %c0_i32_0 = arith.constant 0 : i32
    return %arg0, %c0_i32 : i32, i32
  }
}

</mosaic_0001>

<bundles_post_ra>
// kernel: tpu_custom_call.1
= control target key start
LH: loop header
LB: loop body
LE: loop exit
PB: predicated region body
PF: predicated region fallthrough
CT: control target
= control target key end

     0   :  { %s331_s0 = inlined_call_operand.<no memory space> [shape: s32[1], index: 0, kind: input, shape index: {}]   ;;  %s332_s1 = inlined_call_operand.vmem [shape: bf16[16,32], index: 1, kind: input, shape index: {}]   ;;  %s333_s2 = inlined_call_operand.vmem [shape: bf16[32,64], index: 2, kind: input, shape index: {}]   ;;  %s334_s3 = inlined_call_operand.vmem [shape: f32[1,64], index: 3, kind: input, shape index: {}]   ;;  %s335_s4 = inlined_call_operand.vmem [shape: bf16[64,32], index: 4, kind: input, shape index: {}]   ;;  %s336_s5 = inlined_call_operand.vmem [shape: f32[1,32], index: 5, kind: input, shape index: {}]   ;;  %s337_s6 = inlined_call_operand.hbm [shape: f32[16,32], index: 6, kind: output, shape index: {}]  }
   0x1   :  { %v214_v0 = vld [vmem:[%s333_s2 + $0x8] sm:$0xff] }
   0x2   :  { %12 = vsyncpa [#allocation6], 0  ;;  %68 = vmatpush.bf16.msra.mxu0 %v214_v0  ;;  %v213_v1 = vld [vmem:[%s333_s2] sm:$0xff]  ;;  %vm28_vm0 = vcmask 261120   ;;  %v218_v3 = vld [vmem:[%s335_s4 + $0x18] sm:$0xff]  ;;  %v255_v11 = vmov 0.0  }
   0x3   :  { %v212_v2 = vld [vmem:[%s332_s1] sm:$0xff]  ;;  %137 = vmatpush.bf16.msra.mxu1 %v218_v3  ;;  %v217_v4 = vld [vmem:[%s335_s4 + $0x10] sm:$0xff]  ;;  %v216_v5 = vld [vmem:[%s335_s4 + $0x8] sm:$0xff]  ;;  %29 = vst.msk [vmem:[#allocation2] sm:$0xff] %vm28_vm0, %v255_v11  ;;  %vm129_vm1 = vcmask 523264   ;;  %s256_s10 = smov [#allocation5]  }
   0x4   :  { %v215_v6 = vld [vmem:[%s335_s4] sm:$0xff]  ;;  %30 = vst.msk [vmem:[#allocation2 + $0x8] sm:$0xff] %vm28_vm0, %v255_v11  ;;  %s168_s11 = sshll.u32 %s256_s10, 4  ;;  %s170_s14 = sshll.u32 %s337_s6, 4  ;;  %s169_s11 = int_to_ptr.vmem [resolvable:$true] %s168_s11  ;;  %s171_s14 = int_to_ptr.hbm [resolvable:$true] %s170_s14 }
   0x5   :  { %v223_v7 = vld [vmem:[%s334_s3] ss:$0 sm:$0xff]  ;;  %s258_s15 = smov 8  }
   0x6   :  { %69 = vmatpush.bf16.msra.mxu0 %v213_v1  ;;  %v224_v36 = vld [vmem:[%s336_s5] ss:$0 sm:$0xff]  ;;  %s257_s5 = smov 128  }
   0x7   :  { %138 = vmatpush.bf16.msra.mxu1 %v217_v4 }
   0x9   :  { %194 = vmatmul.msk.bf16.vlgmr.msra.gmra.mxu0 %vm28_vm0, %v212_v2 }
   0xa   :  { %v94_v32 = vld [vmem:[#allocation2] sm:$0xff] }
   0xb   :  { %139 = vmatpush.bf16.msra.mxu1 %v216_v5  ;;  %v95_v35 = vld [vmem:[#allocation2 + $0x8] sm:$0xff] }
   0xf   :  { %140 = vmatpush.bf16.msra.mxu1 %v215_v6 }
  0x86   :  { %v71_v8 = vpop.f32.mrf.mxu0 }
  0x87   :  { %v72_v9 = vadd.f32 %v223_v7, %v71_v8 }
  0x89   :  { %v78_v10 = vmul.f32 0.044715, %v72_v9  ;;  %v76_v26 = vmul.f32 0.5, %v72_v9 }
  0x8b   :  { %v80_v12 = vmul.f32 %v78_v10, %v72_v9 }
  0x8d   :  { %v82_v13 = vmul.f32 %v80_v12, %v72_v9 }
  0x8e   :  { %v73_v14 = vpop.f32.mrf.mxu0 }
  0x8f   :  { %v74_v15 = vadd.f32 %v223_v7, %v73_v14  ;;  %v84_v16 = vadd.f32 %v82_v13, %v72_v9 }
  0x91   :  { %v79_v17 = vmul.f32 0.044715, %v74_v15  ;;  %v86_v19 = vmul.f32 0.7978846, %v84_v16  ;;  %v77_v27 = vmul.f32 0.5, %v74_v15 }
  0x93   :  { %v81_v18 = vmul.f32 %v79_v17, %v74_v15  ;;  %225 = vtanh.f32 %v86_v19 }
  0x95   :  { %v83_v20 = vmul.f32 %v81_v18, %v74_v15 }
  0x97   :  { %v85_v21 = vadd.f32 %v83_v20, %v74_v15 }
  0x99   :  { %v87_v22 = vmul.f32 0.7978846, %v85_v21  ;;  %v226_v23 = vpop.eup %225 }
  0x9a   :  { %v90_v24 = vadd.f32 1.0, %v226_v23 }
  0x9b   :  { %227 = vtanh.f32 %v87_v22 }
  0x9c   :  { %v92_v29 = vmul.f32 %v90_v24, %v76_v26 }
  0xa1   :  { %v228_v25 = vpop.eup %227 }
  0xa2   :  { %v91_v28 = vadd.f32 1.0, %v228_v25 }
  0xa4   :  { %v93_v30 = vmul.f32 %v91_v28, %v77_v27 }
  0xa6   :  { %v96_v31 = vpack.c.bf16 %v93_v30, %v92_v29 }
  0xa8   :  { %211 = vmatmul.msk.bf16.vlgmr.msra.gmra.mxu1 %vm129_vm1, %v96_v31 }
 0x125   :  { %v142_v33 = vpop.f32.mrf.mxu1 }
 0x126   :  { %v147_v34 = vadd.f32 %v142_v33, %v94_v32 }
 0x128   :  { %149 = vst.msk [vmem:[#allocation2] sm:$0xff] %vm28_vm0, %v147_v34 }
 0x12d   :  { %v144_v37 = vpop.f32.mrf.mxu1 }
 0x12e   :  { %v148_v38 = vadd.f32 %v144_v37, %v95_v35 }
 0x12f   :  { %v154_v39 = vld [vmem:[#allocation2] sm:$0xff] }
 0x130   :  { %150 = vst.msk [vmem:[#allocation2 + $0x8] sm:$0xff] %vm28_vm0, %v148_v38  ;;  %v160_v40 = vadd.f32 %v224_v36, %v154_v39 }
 0x132   :  { %162 = vst.msk [vmem:[#allocation5] sm:$0xff] %vm28_vm0, %v160_v40 }
 0x137   :  { %v155_v41 = vld [vmem:[#allocation2 + $0x8] sm:$0xff] }
 0x138   :  { %v161_v42 = vadd.f32 %v224_v36, %v155_v41 }
 0x13a   :  { %163 = vst.msk [vmem:[#allocation5 + $0x8] sm:$0xff] %vm28_vm0, %v161_v42 }
 0x13b   :  { %176 = dma.vmem_to_hbm [thread:$0]  %s169_s11, 256, %s171_s14, [#allocation6], %s257_s5, %s257_s5, %s258_s15  }
 0x13c   :  { %253 = dma.done.wait [#allocation6], 256  }
 0x13d   :  { %254 = vsyncadd [#allocation6], 4294967040 }
 0x13e   :  { %181 = vsyncpa [#allocation6], 1 }

</bundles_post_ra>
